<compile_context>
chip_gen: v5e
topology: v5e:2x2
jax: 0.10.0
libtpu: 0.0.40
codegen_flags: <defaults>
</compile_context>

<pallas_src>
from functools import partial

import jax
import jax.numpy as jnp
from jax.experimental import pallas as pl
from jax.experimental.pallas import tpu as pltpu


# ---------------------------------------------------------------------------
# Layout helpers
# ---------------------------------------------------------------------------
def _round_up(n, m):
    return ((n + m - 1) // m) * m


def _sublane_multiple(dtype):
    """Native sublane packing per dtype: f32 -> 8, bf16 -> 16, int8/fp8 -> 32."""
    itemsize = jnp.dtype(dtype).itemsize
    return {4: 8, 2: 16, 1: 32}.get(itemsize, 8)


# ---------------------------------------------------------------------------
# Backward Pallas kernel: grad_in = -lambda * grad_out
# ---------------------------------------------------------------------------
def _grl_bwd_kernel(scale_ref, g_ref, o_ref):
    neg_lam = scale_ref[0, 0]  # f32 scalar from SMEM (runtime value, no capture)
    o_ref[...] = (g_ref[...].astype(jnp.float32) * neg_lam).astype(o_ref.dtype)


def _neg_scale(g, lambda_):
    orig_shape = g.shape
    dtype = g.dtype
    n = int(g.size)
    if n == 0:
        return g

    itemsize = jnp.dtype(dtype).itemsize
    sub = _sublane_multiple(dtype)

    # --- flatten + pad to a multiple of (sublane * 128) elements -------------
    chunk = sub * 128
    n_pad = _round_up(n, chunk)
    flat = g.reshape(-1)
    if n_pad != n:
        flat = jnp.pad(flat, (0, n_pad - n))

    # --- pick a lane-dense 2-D layout (lanes multiple of 128) ----------------
    lanes = 128
    for cand in (1024, 512, 256):
        if n_pad % cand == 0 and (n_pad // cand) % sub == 0:
            lanes = cand
            break
    rows = n_pad // lanes
    g2d = flat.reshape(rows, lanes)

    # --- tile sizing: ~4 MiB blocks, multiple of the sublane packing ---------
    target_block_bytes = 4 * 1024 * 1024
    tm = max(sub, (target_block_bytes // (lanes * itemsize)) // sub * sub)
    tm = min(tm, rows)
    # Guarantee >= 2 grid tiles when possible (v7x megacore + DMA overlap).
    if rows >= 2 * sub and pl.cdiv(rows, tm) < 2:
        tm = _round_up(pl.cdiv(rows, 2), sub)

    neg_lam = jnp.full((1, 1), -lambda_, dtype=jnp.float32)

    out2d = pl.pallas_call(
        _grl_bwd_kernel,
        out_shape=jax.ShapeDtypeStruct((rows, lanes), dtype),
        grid=(pl.cdiv(rows, tm),),
        in_specs=[
            pl.BlockSpec(memory_space=pltpu.MemorySpace.SMEM),  # -lambda scalar
            pl.BlockSpec((tm, lanes), lambda i: (i, 0)),        # grad tile
        ],
        out_specs=pl.BlockSpec((tm, lanes), lambda i: (i, 0)),
        input_output_aliases={1: 0},
        cost_estimate=pl.CostEstimate(
            flops=n_pad, transcendentals=0, bytes_accessed=2 * n_pad * itemsize
        ),
        compiler_params=pltpu.CompilerParams(
            dimension_semantics=("parallel",),  # shards grid across v7x's 2 TCs
            vmem_limit_bytes=48 << 20,
        ),
    )(neg_lam, g2d)

    out_flat = out2d.reshape(-1)
    if n_pad != n:
        out_flat = out_flat[:n]
    return out_flat.reshape(orig_shape)


# ---------------------------------------------------------------------------
# GradientReversal (custom_vjp; lambda_ is a static, non-differentiable float)
# ---------------------------------------------------------------------------
@partial(jax.custom_vjp, nondiff_argnums=(1,))
def gradient_reversal(x, lambda_):
    # Forward: identity. No copy kernel — a clone of an immutable JAX array is
    # semantically the array itself; dropping the copy saves an HBM round-trip.
    return x


def _grl_fwd(x, lambda_):
    return x, None  # no residuals needed


def _grl_bwd(lambda_, _res, g):
    return (_neg_scale(g, lambda_),)


gradient_reversal.defvjp(_grl_fwd, _grl_bwd)


class GradientReversal:
    """JAX/Pallas equivalent of the PyTorch GradientReversal module."""

    def __init__(self, lambda_=1.0):
        self.lambda_ = float(lambda_)

    def __call__(self, x):
        return gradient_reversal(x, self.lambda_)


# ---------------------------------------------------------------------------
# Demo / smoke test
# ---------------------------------------------------------------------------
if __name__ == "__main__":
    key = jax.random.PRNGKey(0)
    # NCHW input, same convention as the PyTorch module.
    x = jax.random.normal(key, (2, 4, 16, 16), dtype=jnp.float32)

    # lambda = 1.0 : forward identity, grad of sum() == -1 everywhere.
    grl = GradientReversal(lambda_=1.0)
    y = jax.block_until_ready(grl(x))
    assert y.shape == x.shape and y.dtype == x.dtype
    assert bool(jnp.allclose(y, x))

    gx = jax.block_until_ready(jax.grad(lambda a: jnp.sum(grl(a)))(x))
    assert bool(jnp.allclose(gx, -jnp.ones_like(x)))

    # lambda = 2.5 : gradient scaled by -2.5 (weighted-sum upstream grad).
    grl2 = GradientReversal(lambda_=2.5)
    w = jax.random.normal(jax.random.PRNGKey(1), x.shape, dtype=jnp.float32)
    gx2 = jax.block_until_ready(jax.grad(lambda a: jnp.sum(grl2(a) * w))(x))
    assert bool(jnp.allclose(gx2, -2.5 * w, rtol=1e-6, atol=1e-6))

    # Odd total size -> exercises the pad-and-slice path.
    x_odd = jax.random.normal(jax.random.PRNGKey(2), (3, 5, 7), dtype=jnp.float32)
    gx_odd = jax.block_until_ready(
        jax.grad(lambda a: jnp.sum(GradientReversal(0.5)(a) * 3.0))(x_odd)
    )
    assert bool(jnp.allclose(gx_odd, -0.5 * 3.0 * jnp.ones_like(x_odd)))

    # bf16 gradients -> exercises dtype-aware sublane rounding.
    x_bf = jax.random.normal(jax.random.PRNGKey(3), (2, 4, 16, 16)).astype(jnp.bfloat16)
    gx_bf = jax.block_until_ready(
        jax.grad(lambda a: jnp.sum(grl(a).astype(jnp.float32)))(x_bf)
    )
    assert gx_bf.dtype == jnp.bfloat16
    assert bool(jnp.allclose(gx_bf.astype(jnp.float32), -1.0, rtol=1e-2, atol=1e-2))

    print("KERNEL_OK")
</pallas_src>

<mosaic_0001>
module attributes {stable_mosaic.version = 11 : i64} {
  func.func @_grl_bwd_kernel(%arg0: i32, %arg1: memref<1x1xf32, #tpu.memory_space<smem>>, %arg2: memref<8x256xf32, #tpu.memory_space<vmem>>, %arg3: memref<8x256xf32, #tpu.memory_space<vmem>>) attributes {dimension_semantics = [#tpu.dimension_semantics<parallel>], iteration_bounds = array<i64: 1>, scalar_prefetch = 0 : i64, scratch_operands = 0 : i64, tpu.core_type = #tpu.core_type<tc>, window_params = [{transform_indices = @transform_0, window_bounds = array<i64: 1, 1>}, {transform_indices = @transform_1, window_bounds = array<i64: 8, 256>}, {transform_indices = @transform_2, window_bounds = array<i64: 8, 256>}]} {
    %c0 = arith.constant 0 : index
    %c0_0 = arith.constant 0 : index
    %0 = memref.load %arg1[%c0, %c0_0] : memref<1x1xf32, #tpu.memory_space<smem>>
    %c0_1 = arith.constant 0 : index
    %c0_2 = arith.constant 0 : index
    %1 = vector.load %arg2[%c0_1, %c0_2] : memref<8x256xf32, #tpu.memory_space<vmem>>, vector<8x256xf32>
    %2 = vector.broadcast %0 : f32 to vector<8x256xf32>
    %3 = arith.mulf %1, %2 : vector<8x256xf32>
    %c0_3 = arith.constant 0 : index
    %c0_4 = arith.constant 0 : index
    %4 = vector.load %arg3[%c0_3, %c0_4] : memref<8x256xf32, #tpu.memory_space<vmem>>, vector<8x256xf32>
    tpu.vector_store %arg3[%c0_3, %c0_4], %3 {strides = array<i32>} : memref<8x256xf32, #tpu.memory_space<vmem>>, vector<8x256xf32>,
    return
  }
  func.func @transform_0(%arg0: i32) -> (i32, i32) {
    %c0_i32 = arith.constant 0 : i32
    %c0_i32_0 = arith.constant 0 : i32
    %c0_i32_1 = arith.constant 0 : i32
    return %c0_i32, %c0_i32_0 : i32, i32
  }
  func.func @transform_1(%arg0: i32) -> (i32, i32) {
    %c0_i32 = arith.constant 0 : i32
    %c0_i32_0 = arith.constant 0 : i32
    return %arg0, %c0_i32 : i32, i32
  }
  func.func @transform_2(%arg0: i32) -> (i32, i32) {
    %c0_i32 = arith.constant 0 : i32
    %c0_i32_0 = arith.constant 0 : i32
    return %arg0, %c0_i32 : i32, i32
  }
}

</mosaic_0001>

<bundles_post_ra>
// kernel: tpu_custom_call.1
= control target key start
LH: loop header
LB: loop body
LE: loop exit
PB: predicated region body
PF: predicated region fallthrough
CT: control target
= control target key end

     0   :  { %8 = vsyncpa [#allocation4], 0  ;;  %s132_s0 = inlined_call_operand.<no memory space> [shape: f32[1,1], index: 0, kind: input, shape index: {}]   ;;  %s133_s1 = inlined_call_operand.hbm [shape: f32[8,256], index: 1, kind: input, shape index: {}, may-alias: {1,2}]   ;;  %s134_s2 = inlined_call_operand.hbm [shape: f32[8,256], index: 2, kind: output, shape index: {}, may-alias: {1,2}]  }
   0x1   :  { %9 = vsyncpa [#allocation5], 0  ;;  %s17_s11 = sshll.u32 %s133_s1, 4  ;;  %s106_s12 = smov [#allocation3]   ;;  %s18_s11 = int_to_ptr.hbm [resolvable:$true] %s17_s11 }
   0x2   :  { %s19_s13 = sshll.u32 %s106_s12, 4  ;;  %s20_s13 = int_to_ptr.vmem [resolvable:$true] %s19_s13 }
   0x3   :  { %22 = dma.hbm_to_vmem [thread:$0]  %s18_s11, 256, %s20_s13, [#allocation4]  }
   0x4   :  { %102 = dma.done.wait [#allocation4], 256  }
   0x5   :  { %103 = vsyncadd [#allocation4], 4294967040  ;;  %v30_v0 = vstv %s132_s0  ;;  %s107_s16 = smov [#allocation6]   ;;  %s42_s20 = sshll.u32 %s134_s2, 4  ;;  %v28_v1 = vld [vmem:[#allocation3] sm:$0xff]  ;;  %v29_v2 = vld [vmem:[#allocation3 + $0x8] sm:$0xff]  ;;  %s43_s20 = int_to_ptr.hbm [resolvable:$true] %s42_s20 }
   0x6   :  { %s40_s17 = sshll.u32 %s107_s16, 4  ;;  %v31_v3 = vmul.f32 %v30_v0, %v28_v1  ;;  %v32_v4 = vmul.f32 %v30_v0, %v29_v2  ;;  %s41_s17 = int_to_ptr.vmem [resolvable:$true] %s40_s17 }
   0x8   :  { %33 = vst [vmem:[#allocation6] sm:$0xff] %v31_v3 }
   0x9   :  { %34 = vst [vmem:[#allocation6 + $0x8] sm:$0xff] %v32_v4 }
   0xa   :  { %45 = dma.vmem_to_hbm [thread:$0]  %s41_s17, 256, %s43_s20, [#allocation5]  }
   0xb   :  { %104 = dma.done.wait [#allocation5], 256  }
   0xc   :  { %105 = vsyncadd [#allocation5], 4294967040 }
   0xd   :  { %50 = vsyncpa [#allocation4], 1 }
   0xe   :  { %51 = vsyncpa [#allocation5], 1 }

</bundles_post_ra>
